<compile_context>
chip_gen: v7x
topology: tpu7x:2x2x1
jax: 0.10.0
libtpu: 0.0.40
codegen_flags: <defaults>
</compile_context>

<pallas_src>
import functools
import math

import jax
import jax.numpy as jnp
from jax.experimental import pallas as pl
from jax.experimental.pallas import tpu as pltpu


_FFN_CHUNK = 512  # columns of the 4C hidden dim processed per FFN chunk


def _block_kernel(x_ref, g1_ref, wqkv_ref, wproj_ref, g2_ref,
                  wl1_ref, wl2_ref, wl3_ref, o_ref, *, n_head: int):
    eps = 1e-5
    x = x_ref[...].astype(jnp.float32)          # (T, C) residual stream, f32
    T, C = x.shape
    H = n_head
    D = C // H

    # ---- RMSNorm 1 (f32) ----
    g1 = g1_ref[0]                              # (C,)
    h = x * jax.lax.rsqrt(jnp.mean(x * x, axis=-1, keepdims=True) + eps) * g1
    h16 = h.astype(jnp.bfloat16)

    # ---- fused QKV projection: (T, C) @ (C, 3C), bf16 MXU, f32 accum ----
    # 1/sqrt(D) is already folded into the Q columns of wqkv (wrapper-side),
    # so no per-score scale multiply is needed below.
    qkv = jnp.dot(h16, wqkv_ref[...], preferred_element_type=jnp.float32)
    qkv16 = qkv.astype(jnp.bfloat16)            # (T, 3C)

    # Causal mask, hoisted out of the per-head loop.
    row = jax.lax.broadcasted_iota(jnp.int32, (T, T), 0)   # query index
    col = jax.lax.broadcasted_iota(jnp.int32, (T, T), 1)   # key index
    causal = col <= row                                     # (T, T)

    # ---- per-head attention; output projection fused into one GEMM ----
    # Per-head context vectors are staged bf16 in PyTorch head-concat order
    # and projected with a single C-contraction (T, C) @ (C, C) matmul.
    head_ctx = []
    for hd in range(H):                          # H static & small -> unrolled
        q_h = qkv16[:, 0 * C + hd * D:0 * C + (hd + 1) * D]    # (T, D)
        k_h = qkv16[:, 1 * C + hd * D:1 * C + (hd + 1) * D]    # (T, D)
        v_h = qkv16[:, 2 * C + hd * D:2 * C + (hd + 1) * D]    # (T, D)

        # scores = q_h @ k_h^T via an "nt" dot_general (no in-kernel transpose)
        s = jax.lax.dot_general(q_h, k_h, (((1,), (1,)), ((), ())),
                                preferred_element_type=jnp.float32)
        s = jnp.where(causal, s, jnp.float32(-1e30))
        s = s - jnp.max(s, axis=-1, keepdims=True)
        p = jnp.exp(s)
        p = p * pl.reciprocal(jnp.sum(p, axis=-1, keepdims=True), approx=True)

        ctx = jnp.dot(p.astype(jnp.bfloat16), v_h,
                      preferred_element_type=jnp.float32)       # (T, D)
        head_ctx.append(ctx.astype(jnp.bfloat16))

    a_all = jnp.concatenate(head_ctx, axis=-1)                  # (T, C) bf16
    x = x + jnp.dot(a_all, wproj_ref[...],
                    preferred_element_type=jnp.float32)

    # ---- RMSNorm 2 (f32) ----
    g2 = g2_ref[0]
    h2 = x * jax.lax.rsqrt(jnp.mean(x * x, axis=-1, keepdims=True) + eps) * g2
    h2_16 = h2.astype(jnp.bfloat16)

    # ---- SwiGLU FFN: l2(silu(l1(h2)) * l3(h2)), hidden dim chunked ----
    # f32 intermediates bounded to (T, chunk) instead of 3x (T, 4C) live.
    hidden = wl1_ref.shape[1]                                   # 4C
    chunk = min(_FFN_CHUNK, hidden)
    ff = jnp.zeros((T, C), jnp.float32)
    for c0 in range(0, hidden, chunk):
        a_c = jnp.dot(h2_16, wl1_ref[:, c0:c0 + chunk],
                      preferred_element_type=jnp.float32)       # (T, chunk)
        b_c = jnp.dot(h2_16, wl3_ref[:, c0:c0 + chunk],
                      preferred_element_type=jnp.float32)       # (T, chunk)
        silu_c = a_c * pl.reciprocal(1.0 + jnp.exp(-a_c), approx=True)   # EUP
        g_c = (silu_c * b_c).astype(jnp.bfloat16)
        ff = ff + jnp.dot(g_c, wl2_ref[c0:c0 + chunk, :],
                          preferred_element_type=jnp.float32)   # (T, C)

    o_ref[...] = (x + ff).astype(o_ref.dtype)


def prepare_block_params(params, n_head):
    """One-time parameter prep: transpose to (in, out), cast to bf16, fold
    1/sqrt(D) into the Q columns of the fused QKV weight.  Call once and
    reuse so the per-step path pays no HBM transpose/cast traffic."""
    C = params['rms1'].shape[0]
    D = C // n_head
    w_dtype = jnp.bfloat16

    wqkv_t = jnp.asarray(params['wqkv'], jnp.float32).T          # (C, 3C)
    q_scale = jnp.concatenate([
        jnp.full((C,), 1.0 / math.sqrt(D), jnp.float32),
        jnp.ones((2 * C,), jnp.float32)])
    wqkv_t = (wqkv_t * q_scale[None, :]).astype(w_dtype)

    return {
        'g1': jnp.asarray(params['rms1'], jnp.float32).reshape(1, C),
        'g2': jnp.asarray(params['rms2'], jnp.float32).reshape(1, C),
        'wqkv_t': wqkv_t,                                                  # (C, 3C)
        'wproj_t': jnp.asarray(params['wproj'], jnp.float32).T.astype(w_dtype),  # (C, C)
        'wl1_t': jnp.asarray(params['wl1'], jnp.float32).T.astype(w_dtype),      # (C, 4C)
        'wl2_t': jnp.asarray(params['wl2'], jnp.float32).T.astype(w_dtype),      # (4C, C)
        'wl3_t': jnp.asarray(params['wl3'], jnp.float32).T.astype(w_dtype),      # (C, 4C)
    }


def block_forward(x, prepped, n_head, *, vmem_limit_bytes=48 * 1024 * 1024):
    """x: (B, T, C) float32. prepped: output of prepare_block_params()."""
    B, T, C = x.shape

    def wspec(shape):
        # Weights / gains: full array, constant block index across the batch
        # grid -> single-buffer them (double-buffering buys nothing and
        # doubles resident weight VMEM).
        nd = len(shape)
        return pl.BlockSpec(shape, lambda b, _nd=nd: (0,) * _nd,
                            pipeline_mode=pl.Buffered(1))

    xo_spec = lambda: pl.BlockSpec((pl.Squeezed(), T, C), lambda b: (b, 0, 0))

    kernel = functools.partial(_block_kernel, n_head=n_head)
    return pl.pallas_call(
        kernel,
        out_shape=jax.ShapeDtypeStruct((B, T, C), x.dtype),
        grid_spec=pltpu.PrefetchScalarGridSpec(
            num_scalar_prefetch=0,
            grid=(B,),
            in_specs=[
                xo_spec(),
                wspec(prepped['g1'].shape),
                wspec(prepped['wqkv_t'].shape),
                wspec(prepped['wproj_t'].shape),
                wspec(prepped['g2'].shape),
                wspec(prepped['wl1_t'].shape),
                wspec(prepped['wl2_t'].shape),
                wspec(prepped['wl3_t'].shape),
            ],
            out_specs=xo_spec(),
        ),
        compiler_params=pltpu.CompilerParams(
            dimension_semantics=("parallel",),
            vmem_limit_bytes=vmem_limit_bytes),
    )(x, prepped['g1'], prepped['wqkv_t'], prepped['wproj_t'], prepped['g2'],
      prepped['wl1_t'], prepped['wl2_t'], prepped['wl3_t'])


# ---------------- pure-JAX reference (for correctness check) ----------------
def _ref_forward(x, params, n_head):
    eps = 1e-5
    B, T, C = x.shape
    H = n_head
    D = C // H

    def rms(v, g):
        return v * jax.lax.rsqrt(jnp.mean(v * v, axis=-1, keepdims=True) + eps) * g

    h = rms(x, params['rms1'])
    qkv = h @ params['wqkv'].T
    q, k, v = jnp.split(qkv, 3, axis=-1)
    q = q.reshape(B, T, H, D).transpose(0, 2, 1, 3)
    k = k.reshape(B, T, H, D).transpose(0, 2, 1, 3)
    v = v.reshape(B, T, H, D).transpose(0, 2, 1, 3)
    s = jnp.einsum('bhtd,bhsd->bhts', q, k) / math.sqrt(D)
    mask = jnp.tril(jnp.ones((T, T), dtype=bool))
    s = jnp.where(mask, s, -jnp.inf)
    p = jax.nn.softmax(s, axis=-1)
    a = jnp.einsum('bhts,bhsd->bhtd', p, v).transpose(0, 2, 1, 3).reshape(B, T, C)
    x = x + a @ params['wproj'].T

    h2 = rms(x, params['rms2'])
    a1 = h2 @ params['wl1'].T
    a3 = h2 @ params['wl3'].T
    ff = (jax.nn.silu(a1) * a3) @ params['wl2'].T
    return x + ff


if __name__ == "__main__":
    B, T, C, H = 2, 8, 32, 4
    key = jax.random.PRNGKey(0)
    ks = jax.random.split(key, 7)

    params = {
        'rms1': jnp.ones((C,), jnp.float32),
        'rms2': jnp.ones((C,), jnp.float32),
        'wqkv': 0.02 * jax.random.normal(ks[0], (3 * C, C), jnp.float32),
        'wproj': 0.02 * jax.random.normal(ks[1], (C, C), jnp.float32),
        'wl1': 0.02 * jax.random.normal(ks[2], (4 * C, C), jnp.float32),
        'wl2': 0.02 * jax.random.normal(ks[3], (C, 4 * C), jnp.float32),
        'wl3': 0.02 * jax.random.normal(ks[4], (4 * C, C), jnp.float32),
    }
    x = jax.random.normal(ks[5], (B, T, C), jnp.float32)

    prepped = prepare_block_params(params, H)   # one-time weight preprocessing
    out = block_forward(x, prepped, H)
    out = jax.block_until_ready(out)

    ref = _ref_forward(x, params, H)
    # bf16 MXU matmuls + approx (EUP) reciprocals -> loose tolerance vs the
    # f32 reference; documented precision trade-off.
    err = jnp.max(jnp.abs(out - ref))
    assert jnp.allclose(out, ref, atol=1e-2, rtol=1e-2), \
        f"mismatch: max abs err {err}"

    print("KERNEL_OK")
</pallas_src>

<mosaic_0001>
module attributes {stable_mosaic.version = 11 : i64} {
  func.func @_block_kernel(%arg0: i32, %arg1: memref<1x8x32xf32, #tpu.memory_space<vmem>>, %arg2: memref<1x32xf32, #tpu.memory_space<vmem>>, %arg3: memref<32x96xbf16, #tpu.memory_space<vmem>>, %arg4: memref<32x32xbf16, #tpu.memory_space<vmem>>, %arg5: memref<1x32xf32, #tpu.memory_space<vmem>>, %arg6: memref<32x128xbf16, #tpu.memory_space<vmem>>, %arg7: memref<128x32xbf16, #tpu.memory_space<vmem>>, %arg8: memref<32x128xbf16, #tpu.memory_space<vmem>>, %arg9: memref<1x8x32xf32, #tpu.memory_space<vmem>>) attributes {dimension_semantics = [#tpu.dimension_semantics<parallel>], iteration_bounds = array<i64: 2>, scalar_prefetch = 0 : i64, scratch_operands = 0 : i64, tpu.core_type = #tpu.core_type<tc>, window_params = [{transform_indices = @transform_0, window_bounds = array<i64: 1, 8, 32>}, {pipeline_mode = #tpu.pipeline_mode<synchronous>, transform_indices = @transform_1, window_bounds = array<i64: 1, 32>}, {pipeline_mode = #tpu.pipeline_mode<synchronous>, transform_indices = @transform_2, window_bounds = array<i64: 32, 96>}, {pipeline_mode = #tpu.pipeline_mode<synchronous>, transform_indices = @transform_3, window_bounds = array<i64: 32, 32>}, {pipeline_mode = #tpu.pipeline_mode<synchronous>, transform_indices = @transform_4, window_bounds = array<i64: 1, 32>}, {pipeline_mode = #tpu.pipeline_mode<synchronous>, transform_indices = @transform_5, window_bounds = array<i64: 32, 128>}, {pipeline_mode = #tpu.pipeline_mode<synchronous>, transform_indices = @transform_6, window_bounds = array<i64: 128, 32>}, {pipeline_mode = #tpu.pipeline_mode<synchronous>, transform_indices = @transform_7, window_bounds = array<i64: 32, 128>}, {transform_indices = @transform_8, window_bounds = array<i64: 1, 8, 32>}]} {
    %c0 = arith.constant 0 : index
    %c0_0 = arith.constant 0 : index
    %c0_1 = arith.constant 0 : index
    %0 = vector.load %arg1[%c0, %c0_0, %c0_1] : memref<1x8x32xf32, #tpu.memory_space<vmem>>, vector<1x8x32xf32>
    %1 = vector.shape_cast %0 : vector<1x8x32xf32> to vector<8x32xf32>
    %c0_2 = arith.constant 0 : index
    %c0_3 = arith.constant 0 : index
    %2 = vector.load %arg2[%c0_2, %c0_3] : memref<1x32xf32, #tpu.memory_space<vmem>>, vector<1x32xf32>
    %3 = vector.shape_cast %2 : vector<1x32xf32> to vector<32xf32>
    %4 = arith.mulf %1, %1 : vector<8x32xf32>
    %cst = arith.constant dense<0.000000e+00> : vector<8xf32>
    %5 = vector.multi_reduction <add>, %4, %cst [1] : vector<8x32xf32> to vector<8xf32>
    %6 = vector.shape_cast %5 : vector<8xf32> to vector<8x1xf32>
    %cst_4 = arith.constant 3.200000e+01 : f32
    %7 = vector.broadcast %cst_4 : f32 to vector<8x1xf32>
    %8 = arith.divf %6, %7 : vector<8x1xf32>
    %cst_5 = arith.constant 9.99999974E-6 : f32
    %9 = vector.broadcast %cst_5 : f32 to vector<8x1xf32>
    %10 = arith.addf %8, %9 : vector<8x1xf32>
    %11 = math.rsqrt %10 : vector<8x1xf32>
    %12 = vector.broadcast %11 : vector<8x1xf32> to vector<8x32xf32>
    %13 = arith.mulf %1, %12 : vector<8x32xf32>
    %14 = vector.shape_cast %3 : vector<32xf32> to vector<1x32xf32>
    %15 = vector.broadcast %14 : vector<1x32xf32> to vector<8x32xf32>
    %16 = arith.mulf %13, %15 : vector<8x32xf32>
    %17 = arith.truncf %16 : vector<8x32xf32> to vector<8x32xbf16>
    %c0_6 = arith.constant 0 : index
    %c0_7 = arith.constant 0 : index
    %18 = vector.load %arg3[%c0_6, %c0_7] : memref<32x96xbf16, #tpu.memory_space<vmem>>, vector<32x96xbf16>
    %cst_8 = arith.constant dense<0.000000e+00> : vector<8x96xf32>
    %19 = tpu.matmul %17, %18, %cst_8 {dimension_numbers = #tpu.dot_dimension_numbers<[1], [0], [0], [1], [0, 0, 1, 1], [], []>} : vector<8x32xbf16>, vector<32x96xbf16>, vector<8x96xf32> -> vector<8x96xf32>
    %20 = arith.truncf %19 : vector<8x96xf32> to vector<8x96xbf16>
    %21 = tpu.iota {dimensions = array<i32: 0>} : vector<8x8xi32>
    %22 = tpu.iota {dimensions = array<i32: 1>} : vector<8x8xi32>
    %23 = arith.cmpi sle, %22, %21 : vector<8x8xi32>
    %24 = vector.extract_strided_slice %20 {offsets = [0, 0], sizes = [8, 8], strides = [1, 1]} : vector<8x96xbf16> to vector<8x8xbf16>
    %25 = vector.extract_strided_slice %20 {offsets = [0, 32], sizes = [8, 8], strides = [1, 1]} : vector<8x96xbf16> to vector<8x8xbf16>
    %26 = vector.extract_strided_slice %20 {offsets = [0, 64], sizes = [8, 8], strides = [1, 1]} : vector<8x96xbf16> to vector<8x8xbf16>
    %cst_9 = arith.constant dense<0.000000e+00> : vector<8x8xf32>
    %27 = tpu.matmul %24, %25, %cst_9 {dimension_numbers = #tpu.dot_dimension_numbers<[1], [1], [0], [0], [0, 0, 1, 0], [], []>} : vector<8x8xbf16>, vector<8x8xbf16>, vector<8x8xf32> -> vector<8x8xf32>
    %cst_10 = arith.constant -1.000000e+30 : f32
    %28 = vector.broadcast %cst_10 : f32 to vector<8x8xf32>
    %29 = arith.select %23, %27, %28 : vector<8x8xi1>, vector<8x8xf32>
    %cst_11 = arith.constant dense<0xFF800000> : vector<8xf32>
    %30 = vector.multi_reduction <maximumf>, %29, %cst_11 [1] : vector<8x8xf32> to vector<8xf32>
    %31 = vector.shape_cast %30 : vector<8xf32> to vector<8x1xf32>
    %32 = vector.broadcast %31 : vector<8x1xf32> to vector<8x8xf32>
    %33 = arith.subf %29, %32 : vector<8x8xf32>
    %34 = math.exp %33 : vector<8x8xf32>
    %cst_12 = arith.constant dense<0.000000e+00> : vector<8xf32>
    %35 = vector.multi_reduction <add>, %34, %cst_12 [1] : vector<8x8xf32> to vector<8xf32>
    %36 = vector.shape_cast %35 : vector<8xf32> to vector<8x1xf32>
    %37 = tpu.reciprocal %36 {approx = true} : vector<8x1xf32> -> vector<8x1xf32>
    %38 = vector.broadcast %37 : vector<8x1xf32> to vector<8x8xf32>
    %39 = arith.mulf %34, %38 : vector<8x8xf32>
    %40 = arith.truncf %39 : vector<8x8xf32> to vector<8x8xbf16>
    %cst_13 = arith.constant dense<0.000000e+00> : vector<8x8xf32>
    %41 = tpu.matmul %40, %26, %cst_13 {dimension_numbers = #tpu.dot_dimension_numbers<[1], [0], [0], [1], [0, 0, 1, 1], [], []>} : vector<8x8xbf16>, vector<8x8xbf16>, vector<8x8xf32> -> vector<8x8xf32>
    %42 = arith.truncf %41 : vector<8x8xf32> to vector<8x8xbf16>
    %43 = vector.extract_strided_slice %20 {offsets = [0, 8], sizes = [8, 8], strides = [1, 1]} : vector<8x96xbf16> to vector<8x8xbf16>
    %44 = vector.extract_strided_slice %20 {offsets = [0, 40], sizes = [8, 8], strides = [1, 1]} : vector<8x96xbf16> to vector<8x8xbf16>
    %45 = vector.extract_strided_slice %20 {offsets = [0, 72], sizes = [8, 8], strides = [1, 1]} : vector<8x96xbf16> to vector<8x8xbf16>
    %cst_14 = arith.constant dense<0.000000e+00> : vector<8x8xf32>
    %46 = tpu.matmul %43, %44, %cst_14 {dimension_numbers = #tpu.dot_dimension_numbers<[1], [1], [0], [0], [0, 0, 1, 0], [], []>} : vector<8x8xbf16>, vector<8x8xbf16>, vector<8x8xf32> -> vector<8x8xf32>
    %cst_15 = arith.constant -1.000000e+30 : f32
    %47 = vector.broadcast %cst_15 : f32 to vector<8x8xf32>
    %48 = arith.select %23, %46, %47 : vector<8x8xi1>, vector<8x8xf32>
    %cst_16 = arith.constant dense<0xFF800000> : vector<8xf32>
    %49 = vector.multi_reduction <maximumf>, %48, %cst_16 [1] : vector<8x8xf32> to vector<8xf32>
    %50 = vector.shape_cast %49 : vector<8xf32> to vector<8x1xf32>
    %51 = vector.broadcast %50 : vector<8x1xf32> to vector<8x8xf32>
    %52 = arith.subf %48, %51 : vector<8x8xf32>
    %53 = math.exp %52 : vector<8x8xf32>
    %cst_17 = arith.constant dense<0.000000e+00> : vector<8xf32>
    %54 = vector.multi_reduction <add>, %53, %cst_17 [1] : vector<8x8xf32> to vector<8xf32>
    %55 = vector.shape_cast %54 : vector<8xf32> to vector<8x1xf32>
    %56 = tpu.reciprocal %55 {approx = true} : vector<8x1xf32> -> vector<8x1xf32>
    %57 = vector.broadcast %56 : vector<8x1xf32> to vector<8x8xf32>
    %58 = arith.mulf %53, %57 : vector<8x8xf32>
    %59 = arith.truncf %58 : vector<8x8xf32> to vector<8x8xbf16>
    %cst_18 = arith.constant dense<0.000000e+00> : vector<8x8xf32>
    %60 = tpu.matmul %59, %45, %cst_18 {dimension_numbers = #tpu.dot_dimension_numbers<[1], [0], [0], [1], [0, 0, 1, 1], [], []>} : vector<8x8xbf16>, vector<8x8xbf16>, vector<8x8xf32> -> vector<8x8xf32>
    %61 = arith.truncf %60 : vector<8x8xf32> to vector<8x8xbf16>
    %62 = vector.extract_strided_slice %20 {offsets = [0, 16], sizes = [8, 8], strides = [1, 1]} : vector<8x96xbf16> to vector<8x8xbf16>
    %63 = vector.extract_strided_slice %20 {offsets = [0, 48], sizes = [8, 8], strides = [1, 1]} : vector<8x96xbf16> to vector<8x8xbf16>
    %64 = vector.extract_strided_slice %20 {offsets = [0, 80], sizes = [8, 8], strides = [1, 1]} : vector<8x96xbf16> to vector<8x8xbf16>
    %cst_19 = arith.constant dense<0.000000e+00> : vector<8x8xf32>
    %65 = tpu.matmul %62, %63, %cst_19 {dimension_numbers = #tpu.dot_dimension_numbers<[1], [1], [0], [0], [0, 0, 1, 0], [], []>} : vector<8x8xbf16>, vector<8x8xbf16>, vector<8x8xf32> -> vector<8x8xf32>
    %cst_20 = arith.constant -1.000000e+30 : f32
    %66 = vector.broadcast %cst_20 : f32 to vector<8x8xf32>
    %67 = arith.select %23, %65, %66 : vector<8x8xi1>, vector<8x8xf32>
    %cst_21 = arith.constant dense<0xFF800000> : vector<8xf32>
    %68 = vector.multi_reduction <maximumf>, %67, %cst_21 [1] : vector<8x8xf32> to vector<8xf32>
    %69 = vector.shape_cast %68 : vector<8xf32> to vector<8x1xf32>
    %70 = vector.broadcast %69 : vector<8x1xf32> to vector<8x8xf32>
    %71 = arith.subf %67, %70 : vector<8x8xf32>
    %72 = math.exp %71 : vector<8x8xf32>
    %cst_22 = arith.constant dense<0.000000e+00> : vector<8xf32>
    %73 = vector.multi_reduction <add>, %72, %cst_22 [1] : vector<8x8xf32> to vector<8xf32>
    %74 = vector.shape_cast %73 : vector<8xf32> to vector<8x1xf32>
    %75 = tpu.reciprocal %74 {approx = true} : vector<8x1xf32> -> vector<8x1xf32>
    %76 = vector.broadcast %75 : vector<8x1xf32> to vector<8x8xf32>
    %77 = arith.mulf %72, %76 : vector<8x8xf32>
    %78 = arith.truncf %77 : vector<8x8xf32> to vector<8x8xbf16>
    %cst_23 = arith.constant dense<0.000000e+00> : vector<8x8xf32>
    %79 = tpu.matmul %78, %64, %cst_23 {dimension_numbers = #tpu.dot_dimension_numbers<[1], [0], [0], [1], [0, 0, 1, 1], [], []>} : vector<8x8xbf16>, vector<8x8xbf16>, vector<8x8xf32> -> vector<8x8xf32>
    %80 = arith.truncf %79 : vector<8x8xf32> to vector<8x8xbf16>
    %81 = vector.extract_strided_slice %20 {offsets = [0, 24], sizes = [8, 8], strides = [1, 1]} : vector<8x96xbf16> to vector<8x8xbf16>
    %82 = vector.extract_strided_slice %20 {offsets = [0, 56], sizes = [8, 8], strides = [1, 1]} : vector<8x96xbf16> to vector<8x8xbf16>
    %83 = vector.extract_strided_slice %20 {offsets = [0, 88], sizes = [8, 8], strides = [1, 1]} : vector<8x96xbf16> to vector<8x8xbf16>
    %cst_24 = arith.constant dense<0.000000e+00> : vector<8x8xf32>
    %84 = tpu.matmul %81, %82, %cst_24 {dimension_numbers = #tpu.dot_dimension_numbers<[1], [1], [0], [0], [0, 0, 1, 0], [], []>} : vector<8x8xbf16>, vector<8x8xbf16>, vector<8x8xf32> -> vector<8x8xf32>
    %cst_25 = arith.constant -1.000000e+30 : f32
    %85 = vector.broadcast %cst_25 : f32 to vector<8x8xf32>
    %86 = arith.select %23, %84, %85 : vector<8x8xi1>, vector<8x8xf32>
    %cst_26 = arith.constant dense<0xFF800000> : vector<8xf32>
    %87 = vector.multi_reduction <maximumf>, %86, %cst_26 [1] : vector<8x8xf32> to vector<8xf32>
    %88 = vector.shape_cast %87 : vector<8xf32> to vector<8x1xf32>
    %89 = vector.broadcast %88 : vector<8x1xf32> to vector<8x8xf32>
    %90 = arith.subf %86, %89 : vector<8x8xf32>
    %91 = math.exp %90 : vector<8x8xf32>
    %cst_27 = arith.constant dense<0.000000e+00> : vector<8xf32>
    %92 = vector.multi_reduction <add>, %91, %cst_27 [1] : vector<8x8xf32> to vector<8xf32>
    %93 = vector.shape_cast %92 : vector<8xf32> to vector<8x1xf32>
    %94 = tpu.reciprocal %93 {approx = true} : vector<8x1xf32> -> vector<8x1xf32>
    %95 = vector.broadcast %94 : vector<8x1xf32> to vector<8x8xf32>
    %96 = arith.mulf %91, %95 : vector<8x8xf32>
    %97 = arith.truncf %96 : vector<8x8xf32> to vector<8x8xbf16>
    %cst_28 = arith.constant dense<0.000000e+00> : vector<8x8xf32>
    %98 = tpu.matmul %97, %83, %cst_28 {dimension_numbers = #tpu.dot_dimension_numbers<[1], [0], [0], [1], [0, 0, 1, 1], [], []>} : vector<8x8xbf16>, vector<8x8xbf16>, vector<8x8xf32> -> vector<8x8xf32>
    %99 = arith.truncf %98 : vector<8x8xf32> to vector<8x8xbf16>
    %100 = tpu.concatenate %42, %61, %80, %99 in 1 : vector<8x8xbf16>, vector<8x8xbf16>, vector<8x8xbf16>, vector<8x8xbf16> -> vector<8x32xbf16>
    %c0_29 = arith.constant 0 : index
    %c0_30 = arith.constant 0 : index
    %101 = vector.load %arg4[%c0_29, %c0_30] : memref<32x32xbf16, #tpu.memory_space<vmem>>, vector<32x32xbf16>
    %cst_31 = arith.constant dense<0.000000e+00> : vector<8x32xf32>
    %102 = tpu.matmul %100, %101, %cst_31 {dimension_numbers = #tpu.dot_dimension_numbers<[1], [0], [0], [1], [0, 0, 1, 1], [], []>} : vector<8x32xbf16>, vector<32x32xbf16>, vector<8x32xf32> -> vector<8x32xf32>
    %103 = arith.addf %1, %102 : vector<8x32xf32>
    %c0_32 = arith.constant 0 : index
    %c0_33 = arith.constant 0 : index
    %104 = vector.load %arg5[%c0_32, %c0_33] : memref<1x32xf32, #tpu.memory_space<vmem>>, vector<1x32xf32>
    %105 = vector.shape_cast %104 : vector<1x32xf32> to vector<32xf32>
    %106 = arith.mulf %103, %103 : vector<8x32xf32>
    %cst_34 = arith.constant dense<0.000000e+00> : vector<8xf32>
    %107 = vector.multi_reduction <add>, %106, %cst_34 [1] : vector<8x32xf32> to vector<8xf32>
    %108 = vector.shape_cast %107 : vector<8xf32> to vector<8x1xf32>
    %cst_35 = arith.constant 3.200000e+01 : f32
    %109 = vector.broadcast %cst_35 : f32 to vector<8x1xf32>
    %110 = arith.divf %108, %109 : vector<8x1xf32>
    %cst_36 = arith.constant 9.99999974E-6 : f32
    %111 = vector.broadcast %cst_36 : f32 to vector<8x1xf32>
    %112 = arith.addf %110, %111 : vector<8x1xf32>
    %113 = math.rsqrt %112 : vector<8x1xf32>
    %114 = vector.broadcast %113 : vector<8x1xf32> to vector<8x32xf32>
    %115 = arith.mulf %103, %114 : vector<8x32xf32>
    %116 = vector.shape_cast %105 : vector<32xf32> to vector<1x32xf32>
    %117 = vector.broadcast %116 : vector<1x32xf32> to vector<8x32xf32>
    %118 = arith.mulf %115, %117 : vector<8x32xf32>
    %119 = arith.truncf %118 : vector<8x32xf32> to vector<8x32xbf16>
    %cst_37 = arith.constant 0.000000e+00 : f32
    %120 = vector.broadcast %cst_37 : f32 to vector<8x32xf32>
    %c0_38 = arith.constant 0 : index
    %c0_39 = arith.constant 0 : index
    %121 = vector.load %arg6[%c0_38, %c0_39] : memref<32x128xbf16, #tpu.memory_space<vmem>>, vector<32x128xbf16>
    %cst_40 = arith.constant dense<0.000000e+00> : vector<8x128xf32>
    %122 = tpu.matmul %119, %121, %cst_40 {dimension_numbers = #tpu.dot_dimension_numbers<[1], [0], [0], [1], [0, 0, 1, 1], [], []>} : vector<8x32xbf16>, vector<32x128xbf16>, vector<8x128xf32> -> vector<8x128xf32>
    %c0_41 = arith.constant 0 : index
    %c0_42 = arith.constant 0 : index
    %123 = vector.load %arg8[%c0_41, %c0_42] : memref<32x128xbf16, #tpu.memory_space<vmem>>, vector<32x128xbf16>
    %cst_43 = arith.constant dense<0.000000e+00> : vector<8x128xf32>
    %124 = tpu.matmul %119, %123, %cst_43 {dimension_numbers = #tpu.dot_dimension_numbers<[1], [0], [0], [1], [0, 0, 1, 1], [], []>} : vector<8x32xbf16>, vector<32x128xbf16>, vector<8x128xf32> -> vector<8x128xf32>
    %cst_44 = arith.constant 0.000000e+00 : f32
    %125 = vector.broadcast %cst_44 : f32 to vector<8x128xf32>
    %126 = arith.subf %125, %122 : vector<8x128xf32>
    %127 = math.exp %126 : vector<8x128xf32>
    %cst_45 = arith.constant 1.000000e+00 : f32
    %128 = vector.broadcast %cst_45 : f32 to vector<8x128xf32>
    %129 = arith.addf %128, %127 : vector<8x128xf32>
    %130 = tpu.reciprocal %129 {approx = true} : vector<8x128xf32> -> vector<8x128xf32>
    %131 = arith.mulf %122, %130 : vector<8x128xf32>
    %132 = arith.mulf %131, %124 : vector<8x128xf32>
    %133 = arith.truncf %132 : vector<8x128xf32> to vector<8x128xbf16>
    %c0_46 = arith.constant 0 : index
    %c0_47 = arith.constant 0 : index
    %134 = vector.load %arg7[%c0_46, %c0_47] : memref<128x32xbf16, #tpu.memory_space<vmem>>, vector<128x32xbf16>
    %cst_48 = arith.constant dense<0.000000e+00> : vector<8x32xf32>
    %135 = tpu.matmul %133, %134, %cst_48 {dimension_numbers = #tpu.dot_dimension_numbers<[1], [0], [0], [1], [0, 0, 1, 1], [], []>} : vector<8x128xbf16>, vector<128x32xbf16>, vector<8x32xf32> -> vector<8x32xf32>
    %136 = arith.addf %120, %135 : vector<8x32xf32>
    %137 = arith.addf %103, %136 : vector<8x32xf32>
    %c0_49 = arith.constant 0 : index
    %c0_50 = arith.constant 0 : index
    %c0_51 = arith.constant 0 : index
    %138 = vector.load %arg9[%c0_49, %c0_50, %c0_51] : memref<1x8x32xf32, #tpu.memory_space<vmem>>, vector<1x8x32xf32>
    %139 = vector.shape_cast %138 : vector<1x8x32xf32> to vector<8x32xf32>
    %140 = vector.shape_cast %137 : vector<8x32xf32> to vector<1x8x32xf32>
    tpu.vector_store %arg9[%c0_49, %c0_50, %c0_51], %140 {strides = array<i32>} : memref<1x8x32xf32, #tpu.memory_space<vmem>>, vector<1x8x32xf32>,
    return
  }
  func.func @transform_0(%arg0: i32) -> (i32, i32, i32) {
    %c0_i32 = arith.constant 0 : i32
    %c0_i32_0 = arith.constant 0 : i32
    %c0_i32_1 = arith.constant 0 : i32
    return %arg0, %c0_i32, %c0_i32_0 : i32, i32, i32
  }
  func.func @transform_1(%arg0: i32) -> (i32, i32) {
    %c0_i32 = arith.constant 0 : i32
    %c0_i32_0 = arith.constant 0 : i32
    %c0_i32_1 = arith.constant 0 : i32
    return %c0_i32, %c0_i32_0 : i32, i32
  }
  func.func @transform_2(%arg0: i32) -> (i32, i32) {
    %c0_i32 = arith.constant 0 : i32
    %c0_i32_0 = arith.constant 0 : i32
    %c0_i32_1 = arith.constant 0 : i32
    return %c0_i32, %c0_i32_0 : i32, i32
  }
  func.func @transform_3(%arg0: i32) -> (i32, i32) {
    %c0_i32 = arith.constant 0 : i32
    %c0_i32_0 = arith.constant 0 : i32
    %c0_i32_1 = arith.constant 0 : i32
    return %c0_i32, %c0_i32_0 : i32, i32
  }
  func.func @transform_4(%arg0: i32) -> (i32, i32) {
    %c0_i32 = arith.constant 0 : i32
    %c0_i32_0 = arith.constant 0 : i32
    %c0_i32_1 = arith.constant 0 : i32
    return %c0_i32, %c0_i32_0 : i32, i32
  }
  func.func @transform_5(%arg0: i32) -> (i32, i32) {
    %c0_i32 = arith.constant 0 : i32
    %c0_i32_0 = arith.constant 0 : i32
    %c0_i32_1 = arith.constant 0 : i32
    return %c0_i32, %c0_i32_0 : i32, i32
  }
  func.func @transform_6(%arg0: i32) -> (i32, i32) {
    %c0_i32 = arith.constant 0 : i32
    %c0_i32_0 = arith.constant 0 : i32
    %c0_i32_1 = arith.constant 0 : i32
    return %c0_i32, %c0_i32_0 : i32, i32
  }
  func.func @transform_7(%arg0: i32) -> (i32, i32) {
    %c0_i32 = arith.constant 0 : i32
    %c0_i32_0 = arith.constant 0 : i32
    %c0_i32_1 = arith.constant 0 : i32
    return %c0_i32, %c0_i32_0 : i32, i32
  }
  func.func @transform_8(%arg0: i32) -> (i32, i32, i32) {
    %c0_i32 = arith.constant 0 : i32
    %c0_i32_0 = arith.constant 0 : i32
    %c0_i32_1 = arith.constant 0 : i32
    return %arg0, %c0_i32, %c0_i32_0 : i32, i32, i32
  }
}

</mosaic_0001>

<bundles_post_ra>
// kernel: tpu_custom_call.1
= control target key start
LH: loop header
LB: loop body
LE: loop exit
PB: predicated region body
PF: predicated region fallthrough
CT: control target
= control target key end

     0   :  { %13 = vsyncpa [#allocation3], 0  ;;  %s1914_s0 = inlined_call_operand.vmem [shape: f32[2,8,32], index: 0, kind: input, shape index: {}]   ;;  %s1915_s1 = inlined_call_operand.vmem [shape: f32[1,32], index: 1, kind: input, shape index: {}]   ;;  %s1916_s2 = inlined_call_operand.vmem [shape: bf16[32,96], index: 2, kind: input, shape index: {}]   ;;  %s1917_s3 = inlined_call_operand.vmem [shape: bf16[32,32], index: 3, kind: input, shape index: {}]   ;;  %s1918_s4 = inlined_call_operand.vmem [shape: f32[1,32], index: 4, kind: input, shape index: {}]   ;;  %s1919_s5 = inlined_call_operand.vmem [shape: bf16[32,128], index: 5, kind: input, shape index: {}]   ;;  %s1920_s6 = inlined_call_operand.vmem [shape: bf16[128,32], index: 6, kind: input, shape index: {}]   ;;  %s1921_s7 = inlined_call_operand.vmem [shape: bf16[32,128], index: 7, kind: input, shape index: {}]   ;;  %s1922_s8 = inlined_call_operand.hbm [shape: f32[2,8,32], index: 8, kind: output, shape index: {}]  }
   0x1   :  { %15 = vsyncpa [#allocation3 + $0x1], 0  ;;  %s1630_s27 = smov 0   ;;  %s1632_s28 = smov 0  }
   0x2   :  { %s1634_s29 = smov 0   ;;  %s1636_s30 = smov 0  }
   0x3 LB: > { %s1651_s9 = sadd.s32 4294967295, %s1566_s30   ;;  %s1232_s10 = sadd.s32 4294967294, %s1566_s30   ;;  %s1566_s30 = sphi %s1636_s30, %s1928_s30   ;;  %s1562_s29 = sphi %s1634_s29, %s1927_s29   ;;  %s1558_s28 = sphi %s1632_s28, %s1926_s28   ;;  %s1554_s27 = sphi %s1630_s27, %s1925_s27  }
   0x4   : > { %s1655_s11 = sadd.s32 1, %s1566_s30   ;;  %s201_s12 = sadd.s32 1, %s1562_s29 }
   0x5   : > { %s198_s13 = ssub.s32 %s1566_s30, %s1655_s11  ;;  %p211_p0 = scmp.ne.s32.totalorder %s1562_s29, %s1558_s28 }
   0x6   : > { %p199_p1 = scmp.eq.s32.totalorder %s198_s13, 0  ;;  %p212_p2 = scmp.eq.s32.totalorder %s1651_s9, 1 }
   0x7   : > { %p217_p3 = scmp.ne.s32.totalorder %s1558_s28, %s1554_s27  ;;  %p218_p4 = scmp.eq.s32.totalorder %s1232_s10, 1 }
   0x8   : > { %s1666_s14 = scalar_select %p199_p1, %s1562_s29, %s201_s12  }
   0x9   : > { %p1668_p5 = por %p212_p2, %p211_p0  ;;  %p1672_p6 = por %p218_p4, %p217_p3 }
   0xa   : > { %p1235_p7 = scmp.ge.s32.totalorder %s1566_s30, 1  ;;  %p264_p8 = scmp.lt.s32.totalorder %s1566_s30, 3 }
   0xc   : > { %p265_p9 = pnand %p1235_p7, %p264_p8 }
   0xd   : > { %p297_p10 = scmp.lt.s32.totalorder (!%p265_p9), %s1651_s9, 1  ;;  %vm305_vm0 = vcmask (!%p265_p9), 261120   ;;  %v1464_v3 = vld [vmem:[%s1916_s2] sm:$0xff] (!%p265_p9)   ;;  %v1568_v4 = vmov (!%p265_p9), 0.0   ;;  %vm1569_vm1 = vmmov (!%p265_p9), 0   ;;  %v1465_v5 = vld [vmem:[%s1916_s2 + $0x8] sm:$0xff] (!%p265_p9)   ;;  %v382_v21 = vlaneseq (!%p265_p9) }
   0xe   : > { %268 = sbr.rel (%p265_p9) target bundleno = 2796 (0xaec), region = 52  ;;  %1309 = vmatprep.subr.bf16.mxu1 (!%p265_p9), %v1568_v4  ;;  %1313 = vmatprep.mubr.msk.bf16.mxu1 (!%p265_p9), %vm1569_vm1, %v1568_v4  ;;  %v1238_v10 = vld [vmem:[%s1915_s1] ss:$0 sm:$0xff] (!%p265_p9)  ;;  %s1570_s12 = smov (!%p265_p9), 96   ;;  %vm390_vm2 = vcmask (!%p265_p9), 64512   ;;  %vm455_vm4 = vcmask (!%p265_p9), 1043456  }
   0xf   : > { %1310 = vmatpush3.bf16.msra.mxu1 (!%p265_p9), %v1464_v3  ;;  %1335 = vmatprep.subr.bf16.mxu0 (!%p265_p9), %v1568_v4  ;;  %s1571_s13 = smov (!%p265_p9), 120   ;;  %v1721_v22 = vshrl.u32 (!%p265_p9), %v382_v21, 7  ;;  %v1723_v23 = vand.u32 (!%p265_p9), 127, %v382_v21  ;;  %s1574_s19 = smov (!%p265_p9), 64   ;;  %vm848_vm5 = vcmask (!%p265_p9), 130048   ;;  %vm851_vm6 = vcmask (!%p265_p9), 195584  }
  0x10   : > { %1311 = vmatprep.subr.bf16.mxu1 (!%p265_p9), %v1568_v4  ;;  %1337 = vmatprep.mubr.msk.bf16.mxu0 (!%p265_p9), %vm1569_vm1, %v1568_v4  ;;  %s1575_s20 = smov (!%p265_p9), 88   ;;  %s1577_s22 = smov (!%p265_p9), 72  }
  0x11   : > { %vm386_vm3 = vcmp.le.s32.totalorder (!%p265_p9), %v1723_v23, %v1721_v22  ;;  %s1578_s23 = smov (!%p265_p9), 56   ;;  %s1579_s24 = smov (!%p265_p9), 40  }
  0x12   : > { %s1580_s25 = smov (!%p265_p9), 48  }
  0x13   : > { %1312 = vmatpush3.bf16.msra.mxu1 (!%p265_p9), %v1465_v5 }
  0x14   : > { %1317 = vmatprep.subr.bf16.mxu1 (!%p265_p9), %v1568_v4 }
  0x15   : > { %s298_s17 = scalar_select %p297_p10, %s1651_s9, 1 }
  0x17   : > { %s1237_s18 = sshll.u32 %s298_s17, 3  ;;  %s1572_s17 = smov 112  }
  0x18   : > { %s300_s21 = scalar_lea.vmem %s1914_s0, %s1237_s18  ;;  %s1573_s18 = smov 104  }
  0x19   : > { %v1683_v0 = vld [vmem:[%s300_s21] sm:$0xff]  ;;  %s1576_s21 = smov 80  }
  0x1a   : > { %v304_v1 = vmul.f32 %v1683_v0, %v1683_v0 }
  0x1c   : > { %v306_v2 = vsel %vm305_vm0, %v304_v1, 0.0 }
  0x1d   : > { %307 = vadd.xlane.f32.xlu0 %v306_v2 }
  0xaa   : > { %v308_v6 = vpop.xlane.xlu0 %307 }
  0xab   : > { %v310_v7 = vmul.f32 0.03125, %v308_v6 }
  0xad   : > { %v311_v8 = vadd.f32 1e-05, %v310_v7 }
  0xaf   : > { %1480 = vrsqrt.f32 %v311_v8 }
  0xb9   : > { %v1481_v9 = vpop.eup %1480 }
  0xba   : > { %v313_v11 = vmul.f32 %v1481_v9, %v1683_v0 }
  0xbc   : > { %v320_v12 = vmul.f32 %v1238_v10, %v313_v11 }
  0xbe   : > { %v321_v13 = vpack.c.bf16 %v320_v12, %v320_v12 }
  0xc0   : > { %1314 = vmatmul.mubr.msk.bf16.vlgmr.msra.gmra.mrb[0].mxu1 %vm305_vm0, %v321_v13 }
  0xc1   : > { %1319 = vmatprep.mubr.msk.bf16.mxu1 %vm1569_vm1, %v1568_v4 }
 0x193   : > { %v375_v14 = vpop.f32.mrb[0].mxu1 }
 0x194   : > { %v1709_v15 = vpack.c.bf16 %v375_v14, %v375_v14  ;;  %v1315_v16 = vpop.f32.mrb[1].mxu1 }
 0x195   : > { %v378_v17 = vpop.f32.mrb[2].mxu1 }
 0x196   : > { %388 = vrot.lane.b32.xlu0 %v1709_v15, %s1570_s12  ;;  %v1316_v18 = vpop.f32.mrb[3].mxu1 }
 0x19a   : > { %500 = vrot.lane.b32.xlu0 %v1709_v15, %s1571_s13  ;;  %s1584_s13 = smov [#allocation2]  }
 0x19e   : > { %612 = vrot.lane.b32.xlu0 %v1709_v15, %s1572_s17  ;;  %s1581_s17 = smov 8  }
 0x1a2   : > { %724 = vrot.lane.b32.xlu0 %v1709_v15, %s1573_s18  ;;  %s1582_s18 = smov 16  }
 0x208   : > { %v389_v19 = vpop.permute.xlu0 %388 }
 0x209   : > { %v395_v20 = vsel %vm390_vm2, %v389_v19, 0 }
 0x20a   : > { %1318 = vmatpush3.bf16.xpose.msra.mxu1 %v395_v20 }
 0x20b   : > { %1323 = vmatprep.subr.bf16.mxu1 %v1568_v4 }
 0x20c   : > { %v501_v44 = vpop.permute.xlu0 %500 }
 0x210   : > { %v613_v47 = vpop.permute.xlu0 %612 }
 0x211   : > { %1320 = vmatmul.mubr.msk.bf16.vlgmr.msra.gmra.mrb[4].mxu1 %vm390_vm2, %v1709_v15 }
 0x212   : > { %1325 = vmatprep.mubr.msk.bf16.mxu1 %vm1569_vm1, %v1568_v4 }
 0x214   : > { %v725_v49 = vpop.permute.xlu0 %724 }
 0x2e4   : > { %v431_v24 = vpop.f32.mrb[4].mxu1 }
 0x2e5   : > { %v437_v25 = vsel %vm386_vm3, %v431_v24, -1e+30  ;;  %v1321_v26 = vpop.f32.mrb[5].mxu1 }
 0x2e6   : > { %v434_v27 = vpop.f32.mrb[6].mxu1  ;;  %v438_v28 = vsel %vm390_vm2, %v437_v25, -inf }
 0x2e7   : > { %439 = vmax.xlane.f32.xlu1 %v438_v28  ;;  %v1322_v29 = vpop.f32.mrb[7].mxu1 }
 0x2f8   : > { %450 = vrot.lane.b32.xlu1 %v1709_v15, %s1574_s19  ;;  %s1583_s19 = smov 24  }
 0x374   : > { %v440_v30 = vpop.xlane.xlu1 %439 }
 0x375   : > { %v441_v31 = vsub.f32 %v437_v25, %v440_v30 }
 0x377   : > { %v442_v32 = vmul.f32 1.442695, %v441_v31 }
 0x378   : > { %v451_v33 = vpop.permute.xlu1 %450 }
 0x379   : > { %1482 = vpow2.f32 %v442_v32  ;;  %v457_v34 = vsel %vm455_vm4, %v451_v33, 0 }
 0x37a   : > { %1324 = vmatpush3.bf16.msra.mxu1 %v457_v34 }
 0x37b   : > { %1329 = vmatprep.subr.bf16.mxu1 %v1568_v4 }
 0x383   : > { %v1483_v35 = vpop.eup %1482 }
 0x384   : > { %v444_v36 = vsel %vm390_vm2, %v1483_v35, 0.0 }
 0x385   : > { %445 = vadd.xlane.f32.xlu1 %v444_v36 }
 0x396   : > { %502 = vrot.lane.b32.xlu1 %v1709_v15, %s1575_s20  ;;  %s294_s20 = sand.u32 1, %s1558_s28  }
 0x39a   : > { %614 = vrot.lane.b32.xlu1 %v1709_v15, %s1576_s21  ;;  %s1236_s21 = sshll.u32 %s294_s20, 3 }
 0x39e   : > { %726 = vrot.lane.b32.xlu1 %v1709_v15, %s1577_s22  ;;  %s1269_s22 = sshll.u32 %s1651_s9, 7  ;;  %s1160_s9 = scalar_lea.sflag [#allocation3], %s294_s20 }
 0x39f   : > { %s1871_s10 = scalar_lea.hbm %s1922_s8, %s1269_s22 }
 0x412   : > { %v446_v37 = vpop.xlane.xlu1 %445 }
 0x413   : > { %1484 = vrcp.f32 %v446_v37 }
 0x416   : > { %v503_v40 = vpop.permute.xlu1 %502 }
 0x417   : > { %v508_v42 = vsel %vm390_vm2, %v503_v40, 0 }
 0x41a   : > { %v615_v43 = vpop.permute.xlu1 %614 }
 0x41b   : > { %v620_v45 = vsel %vm390_vm2, %v615_v43, 0  ;;  %v1466_v43 = vld [vmem:[%s1917_s3] sm:$0xff]  }
 0x41d   : > { %v1485_v38 = vpop.eup %1484 }
 0x41e   : > { %v448_v39 = vmul.f32 %v1485_v38, %v1483_v35  ;;  %v727_v46 = vpop.permute.xlu1 %726 }
 0x41f   : > { %v732_v48 = vsel %vm390_vm2, %v727_v46, 0 }
 0x420   : > { %v449_v41 = vpack.c.bf16 %v448_v39, %v448_v39 }
 0x422   : > { %1326 = vmatmul.mubr.msk.bf16.vlgmr.msra.gmra.mrb[8].mxu1 %vm390_vm2, %v449_v41 }
 0x423   : > { %1330 = vmatpush3.bf16.xpose.msra.mxu1 %v508_v42  ;;  %1331 = vmatprep.mubr.msk.bf16.mxu1 %vm1569_vm1, %v1568_v4 }
 0x424   : > { %1341 = vmatprep.subr.bf16.mxu1 %v1568_v4 }
 0x42a   : > { %1332 = vmatmul.mubr.msk.bf16.vlgmr.msra.gmra.mrb[12].mxu1 %vm390_vm2, %v501_v44 }
 0x42b   : > { %1342 = vmatpush3.bf16.xpose.msra.mxu1 %v620_v45  ;;  %1343 = vmatprep.mubr.msk.bf16.mxu1 %vm1569_vm1, %v1568_v4 }
 0x42c   : > { %1353 = vmatprep.subr.bf16.mxu1 %v1568_v4 }
 0x432   : > { %1344 = vmatmul.mubr.msk.bf16.vlgmr.msra.gmra.mrb[16].mxu1 %vm390_vm2, %v613_v47  ;;  %v1467_v47 = vld [vmem:[%s1917_s3 + $0x8] sm:$0xff]  }
 0x433   : > { %1354 = vmatpush3.bf16.xpose.msra.mxu1 %v732_v48  ;;  %1355 = vmatprep.mubr.msk.bf16.mxu1 %vm1569_vm1, %v1568_v4 }
 0x434   : > { %1365 = vmatprep.subr.bf16.mxu1 %v1568_v4 }
 0x43a   : > { %1356 = vmatmul.mubr.msk.bf16.vlgmr.msra.gmra.mrb[20].mxu1 %vm390_vm2, %v725_v49 }
 0x43b   : > { %1369 = vmatprep.mubr.msk.bf16.mxu1 %vm1569_vm1, %v1568_v4  ;;  %1366 = vmatpush3.bf16.msra.mxu1 %v1466_v43 }
 0x43c   : > { %1367 = vmatprep.subr.bf16.mxu1 %v1568_v4 }
 0x43f   : > { %1368 = vmatpush3.bf16.msra.mxu1 %v1467_v47 }
 0x440   : > { %1381 = vmatprep.subr.bf16.mxu1 %v1568_v4 }
 0x4f5   : > { %v1756_v50 = vpop.f32.mrb[8].mxu1 }
 0x4f6   : > { %v1327_v51 = vpop.f32.mrb[9].mxu1 }
 0x4f7   : > { %v496_v52 = vpop.f32.mrb[10].mxu1 }
 0x4f8   : > { %v1328_v53 = vpop.f32.mrb[11].mxu1 }
 0x4fd   : > { %v544_v54 = vpop.f32.mrb[12].mxu1 }
 0x4fe   : > { %v550_v55 = vsel %vm386_vm3, %v544_v54, -1e+30  ;;  %v1333_v56 = vpop.f32.mrb[13].mxu1 }
 0x4ff   : > { %v547_v57 = vpop.f32.mrb[14].mxu1  ;;  %v551_v58 = vsel %vm390_vm2, %v550_v55, -inf }
 0x500   : > { %552 = vmax.xlane.f32.xlu1 %v551_v58  ;;  %v1334_v59 = vpop.f32.mrb[15].mxu1 }
 0x505   : > { %v656_v60 = vpop.f32.mrb[16].mxu1 }
 0x506   : > { %v662_v61 = vsel %vm386_vm3, %v656_v60, -1e+30  ;;  %v1345_v62 = vpop.f32.mrb[17].mxu1 }
 0x507   : > { %v659_v63 = vpop.f32.mrb[18].mxu1  ;;  %v663_v1 = vsel %vm390_vm2, %v662_v61, -inf  ;;  %v499_v62 = vpack.c.bf16 %v1756_v50, %v1756_v50 }
 0x508   : > { %664 = vmax.xlane.f32.xlu0 %v663_v1  ;;  %v1346_v2 = vpop.f32.mrb[19].mxu1 }
 0x50d   : > { %v768_v3 = vpop.f32.mrb[20].mxu1 }
 0x50e   : > { %v774_v5 = vsel %vm386_vm3, %v768_v3, -1e+30  ;;  %v1357_v6 = vpop.f32.mrb[21].mxu1 }
 0x50f   : > { %v771_v7 = vpop.f32.mrb[22].mxu1  ;;  %v775_v8 = vsel %vm390_vm2, %v774_v5, -inf }
 0x510   : > { %776 = vmax.xlane.f32.xlu0 %v775_v8  ;;  %v1358_v9 = vpop.f32.mrb[23].mxu1 }
 0x511   : > { %563 = vrot.lane.b32.xlu1 %v1709_v15, %s1578_s23  ;;  %s296_s23 = scalar_lea.vmem [#allocation2], %s1236_s21 }
 0x58d   : > { %v553_v10 = vpop.xlane.xlu1 %552 }
 0x58e   : > { %v554_v11 = vsub.f32 %v550_v55, %v553_v10 }
 0x590   : > { %v555_v12 = vmul.f32 1.442695, %v554_v11 }
 0x591   : > { %v564_v13 = vpop.permute.xlu1 %563 }
 0x592   : > { %1486 = vpow2.f32 %v555_v12  ;;  %v569_v14 = vsel %vm455_vm4, %v564_v13, 0  ;;  %v1468_v12 = vld [vmem:[%s1919_s5] sm:$0xff]  }
 0x593   : > { %1336 = vmatpush3.bf16.msra.mxu0 %v569_v14  ;;  %v1469_v13 = vld [vmem:[%s1921_s7] sm:$0xff]   ;;  %v1471_v14 = vld [vmem:[%s1921_s7 + $0x8] sm:$0xff]  }
 0x594   : > { %1347 = vmatprep.subr.bf16.mxu0 %v1568_v4 }
 0x595   : > { %v665_v16 = vpop.xlane.xlu0 %664 }
 0x596   : > { %v666_v17 = vsub.f32 %v662_v61, %v665_v16 }
 0x598   : > { %v667_v18 = vmul.f32 1.442695, %v666_v17 }
 0x59a   : > { %1488 = vpow2.f32 %v667_v18 }
 0x59c   : > { %v1487_v19 = vpop.eup %1486 }
 0x59d   : > { %v777_v20 = vpop.xlane.xlu0 %776  ;;  %v557_v21 = vsel %vm390_vm2, %v1487_v19, 0.0 }
 0x59e   : > { %v778_v22 = vsub.f32 %v774_v5, %v777_v20  ;;  %558 = vadd.xlane.f32.xlu0 %v557_v21  ;;  %v1253_v20 = vld [vmem:[%s1918_s4] ss:$0 sm:$0xff] }
 0x5a0   : > { %v779_v23 = vmul.f32 1.442695, %v778_v22 }
 0x5a2   : > { %1490 = vpow2.f32 %v779_v23 }
 0x5a4   : > { %v1489_v24 = vpop.eup %1488 }
 0x5a5   : > { %v669_v25 = vsel %vm390_vm2, %v1489_v24, 0.0 }
 0x5a6   : > { %670 = vadd.xlane.f32.xlu1 %v669_v25  ;;  %v1473_v25 = vld [vmem:[%s1920_s6 + $0x8] sm:$0xff]  }
 0x5ac   : > { %v1491_v26 = vpop.eup %1490 }
 0x5ad   : > { %v781_v27 = vsel %vm390_vm2, %v1491_v26, 0.0 }
 0x5ae   : > { %782 = vadd.xlane.f32.xlu0 %v781_v27  ;;  %v1475_v27 = vld [vmem:[%s1920_s6 + $0x18] sm:$0xff]  }
 0x5b7   : > { %787 = vrot.lane.b32.xlu1 %v1709_v15, %s1579_s24  ;;  %s1173_s24 = sshll.u32 %s296_s23, 4  ;;  %s1873_s24 = int_to_ptr.vmem [resolvable:$true] %s1173_s24 }
 0x5b8   : > { %s1504_s12 = scalar_lea.vmem %s1873_s24, 128 }
 0x5b9   : > { %p1505_p11 = scmp.ne.s32.totalorder %s1873_s24, %s1504_s12 }
 0x5bb   : > { %p1506_p12 = pnand %p1505_p11, %p1668_p5 }
 0x5bd   : > { %p1507_p13 = pneg %p1506_p12 }
 0x5c4   : > { %675 = vrot.lane.b32.xlu0 %v1709_v15, %s1580_s25 }
 0x62b   : > { %v559_v28 = vpop.xlane.xlu0 %558 }
 0x62c   : > { %1492 = vrcp.f32 %v559_v28  ;;  %v1476_v28 = vld [vmem:[%s1920_s6 + $0x20] sm:$0xff]  }
 0x633   : > { %v671_v29 = vpop.xlane.xlu1 %670 }
 0x634   : > { %1494 = vrcp.f32 %v671_v29  ;;  %v1477_v29 = vld [vmem:[%s1920_s6 + $0x28] sm:$0xff]  }
 0x636   : > { %v1493_v30 = vpop.eup %1492 }
 0x637   : > { %v561_v31 = vmul.f32 %v1493_v30, %v1487_v19  ;;  %v788_v15 = vpop.permute.xlu1 %787  ;;  %v1478_v30 = vld [vmem:[%s1920_s6 + $0x30] sm:$0xff]  }
 0x638   : > { %v793_v39 = vsel %vm455_vm4, %v788_v15, 0 }
 0x639   : > { %v562_v32 = vpack.c.bf16 %v561_v31, %v561_v31  ;;  %v1479_v31 = vld [vmem:[%s1920_s6 + $0x38] sm:$0xff]  }
 0x63b   : > { %1338 = vmatmul.mubr.msk.bf16.vlgmr.msra.gmra.mrb[0].mxu0 %vm390_vm2, %v562_v32  ;;  %v783_v33 = vpop.xlane.xlu0 %782 }
 0x63c   : > { %1496 = vrcp.f32 %v783_v33  ;;  %1349 = vmatprep.mubr.msk.bf16.mxu0 %vm1569_vm1, %v1568_v4 }
 0x63e   : > { %v1495_v34 = vpop.eup %1494 }
 0x63f   : > { %v673_v35 = vmul.f32 %v1495_v34, %v1489_v24  ;;  %v676_v36 = vpop.permute.xlu0 %675  ;;  %v1472_v24 = vld [vmem:[%s1920_s6] sm:$0xff]  }
 0x640   : > { %v681_v37 = vsel %vm455_vm4, %v676_v36, 0 }
 0x641   : > { %1348 = vmatpush3.bf16.msra.mxu0 %v681_v37  ;;  %v674_v38 = vpack.c.bf16 %v673_v35, %v673_v35 }
 0x642   : > { %1359 = vmatprep.subr.bf16.mxu0 %v1568_v4 }
 0x644   : > { %1350 = vmatmul.mubr.msk.bf16.vlgmr.msra.gmra.mrb[4].mxu0 %vm390_vm2, %v674_v38 }
 0x645   : > { %1360 = vmatpush3.bf16.msra.mxu0 %v793_v39  ;;  %1361 = vmatprep.mubr.msk.bf16.mxu0 %vm1569_vm1, %v1568_v4 }
 0x646   : > { %v1497_v40 = vpop.eup %1496  ;;  %1373 = vmatprep.subr.bf16.mxu0 %v1568_v4 }
 0x647   : > { %v785_v41 = vmul.f32 %v1497_v40, %v1491_v26  ;;  %v1474_v26 = vld [vmem:[%s1920_s6 + $0x10] sm:$0xff]  }
 0x649   : > { %v786_v42 = vpack.c.bf16 %v785_v41, %v785_v41 }
 0x64c   : > { %1362 = vmatmul.mubr.msk.bf16.vlgmr.msra.gmra.mrb[8].mxu0 %vm390_vm2, %v786_v42 }
 0x64d   : > { %1377 = vmatprep.mubr.msk.bf16.mxu0 %vm1569_vm1, %v1568_v4  ;;  %1374 = vmatpush3.bf16.msra.mxu0 %v1468_v12 }
 0x64e   : > { %1375 = vmatprep.subr.bf16.mxu0 %v1568_v4 }
 0x70e   : > { %v605_v44 = vpop.f32.mrb[0].mxu0 }
 0x70f   : > { %v611_v45 = vpack.c.bf16 %v605_v44, %v605_v44  ;;  %v1339_v46 = vpop.f32.mrb[1].mxu0 }
 0x710   : > { %v608_v48 = vpop.f32.mrb[2].mxu0 }
 0x711   : > { %837 = vrot.lane.b32.xlu1 %v611_v45, %s1581_s17  ;;  %v1340_v49 = vpop.f32.mrb[3].mxu0  ;;  %s1508_s17 = sshll.u32 %s1584_s13, 4  ;;  %s1509_s17 = int_to_ptr.vmem [resolvable:$false] %s1508_s17 }
 0x712   : > { %p1511_p0 = scmp.lt.s32.totalorder %s1873_s24, %s1509_s17 }
 0x717   : > { %v717_v51 = vpop.f32.mrb[4].mxu0 }
 0x718   : > { %v723_v52 = vpack.c.bf16 %v717_v51, %v717_v51  ;;  %v1351_v53 = vpop.f32.mrb[5].mxu0 }
 0x719   : > { %v720_v54 = vpop.f32.mrb[6].mxu0 }
 0x71a   : > { %840 = vrot.lane.b32.xlu1 %v723_v52, %s1582_s18  ;;  %v1352_v55 = vpop.f32.mrb[7].mxu0  ;;  %s1510_s18 = scalar_lea.vmem %s1509_s17, 256 }
 0x71b   : > { %p1512_p1 = scmp.lt.s32.totalorder %s1510_s18, %s1504_s12 }
 0x71d   : > { %p1513_p2 = por %p1512_p1, %p1511_p0 }
 0x71f   : > { %v829_v56 = vpop.f32.mrb[8].mxu0  ;;  %p1514_p3 = pnand %p1513_p2, %p1507_p13 }
 0x720   : > { %v835_v57 = vpack.c.bf16 %v829_v56, %v829_v56  ;;  %v1363_v58 = vpop.f32.mrb[9].mxu0 }
 0x721   : > { %v832_v59 = vpop.f32.mrb[10].mxu0 }
 0x722   : > { %843 = vrot.lane.b32.xlu0 %v835_v57, %s1583_s19  ;;  %v1364_v60 = vpop.f32.mrb[11].mxu0 }
 0x783   : > { %v838_v61 = vpop.permute.xlu1 %837 }
 0x784   : > { %v847_v1 = vsel %vm390_vm2, %v499_v62, %v838_v61 }
 0x78c   : > { %v841_v63 = vpop.permute.xlu1 %840 }
 0x78d   : > { %v850_v2 = vsel %vm848_vm5, %v847_v1, %v841_v63 }
 0x794   : > { %v844_v3 = vpop.permute.xlu0 %843 }
 0x795   : > { %v853_v5 = vsel %vm851_vm6, %v850_v2, %v844_v3 }
 0x796   : > { %1370 = vmatmul.mubr.msk.bf16.vlgmr.msra.gmra.mrb[24].mxu1 %vm305_vm0, %v853_v5 }
 0x797   : > { %1385 = vmatprep.mubr.msk.bf16.mxu1 %vm1569_vm1, %v1568_v4  ;;  %1382 = vmatpush3.bf16.msra.mxu1 %v1469_v13 }
 0x798   : > { %1383 = vmatprep.subr.bf16.mxu1 %v1568_v4 }
 0x79b   : > { %1384 = vmatpush3.bf16.msra.mxu1 %v1471_v14 }
 0x869   : > { %v906_v6 = vpop.f32.mrb[24].mxu1 }
 0x86a   : > { %v1806_v7 = vadd.f32 %v906_v6, %v1683_v0  ;;  %v1371_v8 = vpop.f32.mrb[25].mxu1  ;;  %v1470_v0 = vld [vmem:[%s1919_s5 + $0x8] sm:$0xff]  }
 0x86b   : > { %v909_v9 = vpop.f32.mrb[26].mxu1  ;;  %1376 = vmatpush3.bf16.msra.mxu0 %v1470_v0 }
 0x86c   : > { %v1372_v50 = vpop.f32.mrb[27].mxu1  ;;  %v914_v10 = vmul.f32 %v1806_v7, %v1806_v7  ;;  %1389 = vmatprep.subr.bf16.mxu0 %v1568_v4 }
 0x86e   : > { %v915_v11 = vsel %vm305_vm0, %v914_v10, 0.0 }
 0x86f   : > { %916 = vadd.xlane.f32.xlu1 %v915_v11 }
 0x8fc   : > { %v917_v16 = vpop.xlane.xlu1 %916 }
 0x8fd   : > { %v918_v17 = vmul.f32 0.03125, %v917_v16 }
 0x8ff   : > { %v919_v18 = vadd.f32 1e-05, %v918_v17 }
 0x901   : > { %1498 = vrsqrt.f32 %v919_v18 }
 0x90b   : > { %v1499_v19 = vpop.eup %1498 }
 0x90c   : > { %v921_v21 = vmul.f32 %v1499_v19, %v1806_v7 }
 0x90e   : > { %v928_v22 = vmul.f32 %v1253_v20, %v921_v21 }
 0x910   : > { %v929_v23 = vpack.c.bf16 %v928_v22, %v928_v22 }
 0x912   : > { %1378 = vmatmul.mubr.msk.bf16.vlgmr.msra.gmra.mrb[12].mxu0 %vm305_vm0, %v929_v23  ;;  %1386 = vmatmul.mubr.msk.bf16.vlgmr.msra.gmra.mrb[28].mxu1 %vm305_vm0, %v929_v23 }
 0x913   : > { %1405 = vmatprep.mubr.msk.bf16.mxu0 %vm1569_vm1, %v1568_v4  ;;  %1390 = vmatpush3.bf16.msra.mxu0 %v1472_v24 }
 0x914   : > { %1391 = vmatprep.subr.bf16.mxu0 %v1568_v4 }
 0x917   : > { %1392 = vmatpush3.bf16.msra.mxu0 %v1473_v25 }
 0x918   : > { %1393 = vmatprep.subr.bf16.mxu0 %v1568_v4 }
 0x91b   : > { %1394 = vmatpush3.bf16.msra.mxu0 %v1474_v26 }
 0x91c   : > { %1395 = vmatprep.subr.bf16.mxu0 %v1568_v4 }
 0x91f   : > { %1396 = vmatpush3.bf16.msra.mxu0 %v1475_v27 }
 0x920   : > { %1397 = vmatprep.subr.bf16.mxu0 %v1568_v4 }
 0x923   : > { %1398 = vmatpush3.bf16.msra.mxu0 %v1476_v28 }
 0x924   : > { %1399 = vmatprep.subr.bf16.mxu0 %v1568_v4 }
 0x927   : > { %1400 = vmatpush3.bf16.msra.mxu0 %v1477_v29 }
 0x928   : > { %1401 = vmatprep.subr.bf16.mxu0 %v1568_v4 }
 0x92b   : > { %1402 = vmatpush3.bf16.msra.mxu0 %v1478_v30 }
 0x92c   : > { %1403 = vmatprep.subr.bf16.mxu0 %v1568_v4 }
 0x92f   : > { %1404 = vmatpush3.bf16.msra.mxu0 %v1479_v31 }
 0x9e5   : > { %v983_v32 = vpop.f32.mrb[12].mxu0  ;;  %v1039_v33 = vpop.f32.mrb[28].mxu1 }
 0x9e6   : > { %v1045_v34 = vsub.f32 0.0, %v983_v32  ;;  %v1379_v35 = vpop.f32.mrb[13].mxu0  ;;  %v1387_v36 = vpop.f32.mrb[29].mxu1 }
 0x9e7   : > { %v986_v37 = vpop.f32.mrb[14].mxu0  ;;  %v1042_v15 = vpop.f32.mrb[30].mxu1 }
 0x9e8   : > { %v1046_v38 = vmul.f32 1.442695, %v1045_v34  ;;  %v1380_v39 = vpop.f32.mrb[15].mxu0  ;;  %v1388_v40 = vpop.f32.mrb[31].mxu1 }
 0x9ea   : > { %1500 = vpow2.f32 %v1046_v38 }
 0x9f4   : > { %v1501_v41 = vpop.eup %1500 }
 0x9f5   : > { %v1048_v4 = vadd.f32 1.0, %v1501_v41 }
 0x9f7   : > { %1502 = vrcp.f32 %v1048_v4 }
 0xa01   : > { %v1503_v42 = vpop.eup %1502 }
 0xa02   : > { %v1050_v43 = vmul.f32 %v1503_v42, %v983_v32 }
 0xa04   : > { %v1051_v44 = vmul.f32 %v1050_v43, %v1039_v33 }
 0xa06   : > { %v1052_v45 = vpack.c.bf16 %v1051_v44, %v1051_v44 }
 0xa08   : > { %1406 = vmatmul.mubr.bf16.vlgmr.msra.gmra.mrb[16].mxu0 %v1052_v45 }
 0xadb   : > { %v1151_v46 = vpop.f32.mrb[16].mxu0 }
 0xadc   : > { %v1157_v47 = vadd.f32 %v1151_v46, %v1806_v7  ;;  %v1407_v48 = vpop.f32.mrb[17].mxu0 }
 0xadd   : > { %v1154_v49 = vpop.f32.mrb[18].mxu0 }
 0xade   : > { %v1408_v51 = vpop.f32.mrb[19].mxu0  ;;  %1158 = vst.msk [vmem:[%s296_s23] sm:$0xff] %vm305_vm0, %v1157_v47 }
 0xadf   : > { %1517 = shalt.err (!%p1514_p3)
}
 0xae0   : > { %s1518_s19 = scalar_lea.hbm %s1871_s10, 128  ;;  %s1522_s22 = scalar_lea.hbm %s1922_s8, 256 }
 0xae1   : > { %p1519_p4 = scmp.ne.s32.totalorder %s1871_s10, %s1518_s19  ;;  %p1523_p9 = scmp.lt.u32.totalorder %s1871_s10, %s1922_s8 }
 0xae2   : > { %p1524_p10 = scmp.lt.u32.totalorder %s1522_s22, %s1518_s19  ;;  %p1526_p12 = scmp.lt.u32.totalorder %s1518_s19, %s1871_s10 }
 0xae3   : > { %p1520_p7 = pnand %p1519_p4, %p1668_p5 }
 0xae4   : > { %p1525_p11 = por %p1524_p10, %p1523_p9 }
 0xae5   : > { %p1521_p8 = pneg %p1520_p7 }
 0xae6   : > { %p1527_p13 = por %p1526_p12, %p1525_p11 }
 0xae8   : > { %p1528_p0 = pnand %p1527_p13, %p1521_p8 }
 0xaea   : > { %1531 = shalt.err (!%p1528_p0)
}
 0xaeb   : > { %1409 = dma.vmem_to_hbm [thread:$0]  (%p1668_p5), %s1873_s24, 128, %s1871_s10, %s1160_s9  }
 0xaec PF: > { %p1415_p1 = scmp.ge.s32.totalorder %s1566_s30, 2  ;;  %s1185_s26 = sand.u32 1, %s1554_s27  }
 0xaed   : > { %s1186_s12 = scalar_lea.sflag [#allocation3], %s1185_s26 }
 0xaee   : > { %p1412_p2 = pnand %p1415_p1, %p1672_p6 }
 0xaf0   : > { %1549 = dma.done.wait (!%p1412_p2), %s1186_s12, 128  }
 0xaf1   : > { %1551 = vsyncadd (!%p1412_p2), %s1186_s12, 4294967168  ;;  %p18_p3 = scmp.ge.s32.totalorder %s1655_s11, 4   ;;  %s1925_s27 = smov %s1558_s28 }
 0xaf2   : > { %s1926_s28 = smov %s1562_s29  ;;  %s1927_s29 = smov %s1666_s14 }
 0xaf3   : > { %s1928_s30 = smov %s1655_s11  ;;  %20 = sbr.rel (!%p18_p3) target bundleno = 3 (0x3), region = 87 }
 0xafa   :  { %1191 = vsyncpa [#allocation3], 1 }
 0xafb   :  { %1193 = vsyncpa [#allocation3 + $0x1], 1 }

</bundles_post_ra>
